<compile_context>
chip_gen: v7x
topology: tpu7x:2x2x1
jax: 0.10.0
libtpu: 0.0.40
codegen_flags: <defaults>
</compile_context>

<pallas_src>
import math
import functools

import jax
import jax.numpy as jnp
from jax.experimental import pallas as pl
from jax.experimental.pallas import tpu as pltpu

LANE = 128


def _round_up(x, m):
    return (x + m - 1) // m * m


# ----------------------------------------------------------------------------
# Pallas kernel: all dense compute of one RAM glimpse step.
#
# aux slab layout (input):  cols 0:H = 0 | H:2H = hprev | 2H:2H+2 = noise
#                           | 2H+2:2H+4 = loc
# out slab layout (output): cols 0:H = h | 2H:2H+2 = l | 2H+2 = baseline
#                           | 2H+3 = log_pi | 2H+4:2H+4+C = log_prob
# ----------------------------------------------------------------------------
def ram_kernel(std, hidden_dim, num_classes,
               phi_ref, aux_ref, w1_ref, w23_ref, w_head_ref, misc_ref,
               b_head_ref, out_ref):
    H = hidden_dim
    H2 = 2 * H
    C = num_classes
    BT, OUT_W = out_ref.shape

    relu = lambda v: jnp.maximum(v, 0.0)
    dot = lambda a, w: jnp.dot(a, w, preferred_element_type=jnp.float32)

    aux = aux_ref[...]                                  # [BT, OUT_W]
    loc0 = aux[:, H2 + 2:H2 + 3]                        # [BT, 1]
    loc1 = aux[:, H2 + 3:H2 + 4]                        # [BT, 1]

    # Stage 1: [h_g | h_l].  phi branch on the MXU (K = phi_dim, one pass);
    # loc branch as two VPU broadcast-FMAs (misc rows 0,1 hold Wloc placed at
    # cols H:2H); misc row 2 is the packed bias [bphi | bloc].
    a1 = relu(dot(phi_ref[...], w1_ref[...])
              + loc0 * misc_ref[0:1, :] + loc1 * misc_ref[1:2, :]
              + misc_ref[2:3, :])                       # [BT, 2H]

    lane2 = jax.lax.broadcasted_iota(jnp.int32, (BT, H2), 1)
    left = lane2 < H

    # Stage 2: glimpse mix -> [g | hprev].  w23[0] cols H:2H are zero; hprev is
    # carried in by adding aux[:, 0:2H] (zeros | hprev).  relu on the left half
    # only (hprev must pass through untouched).
    t2 = dot(a1, w23_ref[0]) + misc_ref[3:4, :] + aux[:, 0:H2]
    a2 = jnp.where(left, relu(t2), t2)                  # [g | hprev]

    # Stage 3: core RNN -> [h | hprev].  w23[1] has [Wi;Wh] in the left block
    # and an identity block carrying hprev on the right.
    t3 = dot(a2, w23_ref[1]) + misc_ref[4:5, :]
    a3 = jnp.where(left, relu(t3), t3)                  # [h | hprev]

    # Stage 4: one lane-dense (N = OUT_W = 128) head matmul that lands every
    # column in its final output position (h via identity, locator, baseline,
    # classifier logits from the hprev half).
    head = dot(a3, w_head_ref[...]) + b_head_ref[...]   # [BT, OUT_W]

    lane = jax.lax.broadcasted_iota(jnp.int32, (BT, OUT_W), 1)
    is_loc = jnp.logical_and(lane >= H2, lane < H2 + 2)
    is_cls = jnp.logical_and(lane >= H2 + 4, lane < H2 + 4 + C)

    # LocationNetwork: l = clip(tanh(mean_pre) + std*noise, -1, 1).  aux holds
    # the noise exactly at the locator output columns, so this is full-width.
    mean_fw = jnp.tanh(head)
    l_fw = jnp.clip(mean_fw + std * aux, -1.0, 1.0)

    # log_pi = sum over the 2 location dims of Normal(mean, std).log_prob(l).
    inv_two_var = 1.0 / (2.0 * std * std)
    log_const = -math.log(std) - 0.5 * math.log(2.0 * math.pi)
    term = -((l_fw - mean_fw) ** 2) * inv_two_var + log_const
    log_pi = jnp.sum(jnp.where(is_loc, term, 0.0), axis=1, keepdims=True)

    # ActionNetwork: log_softmax restricted to the classifier logit columns.
    neg = jnp.float32(-1e30)
    m = jnp.max(jnp.where(is_cls, head, neg), axis=1, keepdims=True)
    p = jnp.exp(jnp.where(is_cls, head - m, neg))
    lse = m + jnp.log(jnp.sum(p, axis=1, keepdims=True))
    log_prob_fw = head - lse

    # Register-assembled slab, one unmasked full-width store.
    out = head                                          # h, baseline already placed
    out = jnp.where(is_loc, l_fw, out)
    out = jnp.where(lane == H2 + 3, log_pi, out)
    out = jnp.where(is_cls, log_prob_fw, out)
    out_ref[...] = out


# ----------------------------------------------------------------------------
# Glue: retina / foveation (data-dependent gather + avg-pool resize).
# ----------------------------------------------------------------------------
def foveate(img, loc, patch_size, num_scales):
    """img: [B, C, H, W] (NCHW).  loc: [B, 2] in [-1, 1] as (y, x).
    Returns flattened multi-scale glimpse phi: [B, num_scales*C*patch_size^2]."""
    B, C, H, W = img.shape
    max_size = patch_size * (2 ** (num_scales - 1))
    pad = max_size // 2
    padded = jnp.pad(img, ((0, 0), (0, 0), (pad, pad), (pad, pad)))

    cy = (loc[:, 0] + 1.0) * 0.5 * H + pad
    cx = (loc[:, 1] + 1.0) * 0.5 * W + pad

    patches = []
    for s in range(num_scales):
        size = patch_size * (2 ** s)
        y0 = jnp.clip((cy - size / 2.0).astype(jnp.int32), 0, H + 2 * pad - size)
        x0 = jnp.clip((cx - size / 2.0).astype(jnp.int32), 0, W + 2 * pad - size)

        def extract(im, yy, xx):
            return jax.lax.dynamic_slice(im, (0, yy, xx), (C, size, size))

        p = jax.vmap(extract)(padded, y0, x0)            # [B, C, size, size]
        f = 2 ** s                                       # avg-pool down to patch_size
        p = p.reshape(B, C, patch_size, f, patch_size, f).mean(axis=(3, 5))
        patches.append(p)

    phi = jnp.concatenate(patches, axis=1)               # [B, num_scales*C, p, p]
    return phi.reshape(B, -1).astype(jnp.float32)


# ----------------------------------------------------------------------------
# Parameter init (PyTorch nn.Linear default) and one-time packing.
# ----------------------------------------------------------------------------
def linear_params(key, fan_in, fan_out):
    kw, kb = jax.random.split(key)
    bound = 1.0 / math.sqrt(fan_in)
    w = jax.random.uniform(kw, (fan_in, fan_out), jnp.float32, -bound, bound)
    b = jax.random.uniform(kb, (1, fan_out), jnp.float32, -bound, bound)
    return w, b


def init_ram_params(key, patch_size, num_scales, num_channels, hidden_dim, num_classes):
    phi_dim = num_scales * num_channels * patch_size * patch_size
    keys = jax.random.split(key, 9)
    params = {}
    params["phi"] = linear_params(keys[0], phi_dim, hidden_dim)       # glimpse fc_phi
    params["loc"] = linear_params(keys[1], 2, hidden_dim)             # glimpse fc_loc
    params["what"] = linear_params(keys[2], hidden_dim, hidden_dim)   # glimpse fc_what
    params["where"] = linear_params(keys[3], hidden_dim, hidden_dim)  # glimpse fc_where
    params["i2h"] = linear_params(keys[4], hidden_dim, hidden_dim)    # core input->hidden
    params["h2h"] = linear_params(keys[5], hidden_dim, hidden_dim)    # core hidden->hidden
    params["locator"] = linear_params(keys[6], hidden_dim, 2)         # location net
    params["action"] = linear_params(keys[7], hidden_dim, num_classes)  # classifier
    params["base"] = linear_params(keys[8], hidden_dim, 1)            # baseline
    return params


def pack_ram_params(params, *, patch_size, num_scales, num_channels,
                    hidden_dim, num_classes):
    """Pack the 9 Linear layers into a few lane-dense slabs (done once)."""
    H = hidden_dim
    H2 = 2 * H
    C = num_classes
    phi_dim = num_scales * num_channels * patch_size * patch_size
    OUT_W = _round_up(H2 + 4 + C, LANE)

    wphi, bphi = params["phi"]
    wloc, bloc = params["loc"]
    wwhat, bwhat = params["what"]
    wwhere, bwhere = params["where"]
    wi, bi = params["i2h"]
    wh, bh = params["h2h"]
    wl, bl = params["locator"]
    wa, ba = params["action"]
    wb, bb = params["base"]

    eye = jnp.eye(H, dtype=jnp.float32)

    # Stage-1 weight: phi -> [h_g | 0] (loc branch handled on the VPU, K stays phi_dim).
    w1 = jnp.zeros((phi_dim, H2), jnp.float32).at[:, 0:H].set(wphi)

    # misc rows: 0-1 = Wloc (placed at cols H:2H), 2 = [bphi|bloc],
    #            3 = [bwhat+bwhere | 0], 4 = [bi+bh | 0].
    misc = jnp.zeros((5, H2), jnp.float32)
    misc = misc.at[0:2, H:H2].set(wloc)
    misc = misc.at[2, 0:H].set(bphi[0]).at[2, H:H2].set(bloc[0])
    misc = misc.at[3, 0:H].set((bwhat + bwhere)[0])
    misc = misc.at[4, 0:H].set((bi + bh)[0])

    # Stage-2: [h_g|h_l] -> [g | 0]    (hprev added in-kernel from the aux slab).
    w2 = jnp.zeros((H2, H2), jnp.float32)
    w2 = w2.at[0:H, 0:H].set(wwhat).at[H:H2, 0:H].set(wwhere)
    # Stage-3: [g|hprev] -> [h | hprev] (identity block carries hprev through).
    w3 = jnp.zeros((H2, H2), jnp.float32)
    w3 = w3.at[0:H, 0:H].set(wi).at[H:H2, 0:H].set(wh)
    w3 = w3.at[H:H2, H:H2].set(eye)
    w23 = jnp.stack([w2, w3], axis=0)                    # [2, 2H, 2H]

    # Fused lane-dense head, columns already in the output-slab layout.
    w_head = jnp.zeros((H2, OUT_W), jnp.float32)
    w_head = w_head.at[0:H, 0:H].set(eye)                # h passthrough
    w_head = w_head.at[0:H, H2:H2 + 2].set(wl)           # locator mean (from h)
    w_head = w_head.at[0:H, H2 + 2:H2 + 3].set(wb)       # baseline     (from h)
    w_head = w_head.at[H:H2, H2 + 4:H2 + 4 + C].set(wa)  # logits       (from hprev)
    b_head = jnp.zeros((1, OUT_W), jnp.float32)
    b_head = b_head.at[:, H2:H2 + 2].set(bl)
    b_head = b_head.at[:, H2 + 2:H2 + 3].set(bb)
    b_head = b_head.at[:, H2 + 4:H2 + 4 + C].set(ba)

    return dict(w1=w1, w23=w23, w_head=w_head, misc=misc, b_head=b_head,
                phi_dim=phi_dim, hidden_dim=H, num_classes=C)


# ----------------------------------------------------------------------------
# RAM forward wrapper (semantics of RAM.forward).
# ----------------------------------------------------------------------------
def ram_forward(packed, img, loc, hidden_state, noise, *,
                patch_size, num_scales, std, last=False):
    B = img.shape[0]
    H = packed["hidden_dim"]
    H2 = 2 * H
    C = packed["num_classes"]
    phi_dim = packed["phi_dim"]
    OUT_W = packed["w_head"].shape[1]

    # Batch padding / tiling: fill f32 sublanes and expose a parallel grid axis.
    if B <= 128:
        B_pad = _round_up(B, 8)
        BT = B_pad
    else:
        B_pad = _round_up(B, 128)
        BT = 128
    n_tiles = B_pad // BT

    phi = foveate(img, loc, patch_size, num_scales)                  # [B, phi_dim]
    phi = jnp.pad(phi, ((0, B_pad - B), (0, 0)))

    # Per-example aux slab (layout plumbing only): hprev at H:2H, noise at
    # 2H:2H+2 (the locator output columns), loc scalars at 2H+2:2H+4.
    aux = jnp.zeros((B_pad, OUT_W), jnp.float32)
    aux = aux.at[:B, H:H2].set(hidden_state.astype(jnp.float32))
    aux = aux.at[:B, H2:H2 + 2].set(noise.astype(jnp.float32))
    aux = aux.at[:B, H2 + 2:H2 + 4].set(loc.astype(jnp.float32))

    inputs = (phi, aux, packed["w1"], packed["w23"], packed["w_head"],
              packed["misc"], packed["b_head"])

    def batched(shape):
        nd = len(shape)
        return pl.BlockSpec((BT,) + tuple(shape[1:]),
                            lambda i, nd=nd: (i,) + (0,) * (nd - 1))

    def resident(shape):
        nd = len(shape)
        return pl.BlockSpec(tuple(shape), lambda i, nd=nd: (0,) * nd)

    in_specs = [batched(phi.shape), batched(aux.shape),
                resident(packed["w1"].shape), resident(packed["w23"].shape),
                resident(packed["w_head"].shape), resident(packed["misc"].shape),
                resident(packed["b_head"].shape)]
    out_specs = pl.BlockSpec((BT, OUT_W), lambda i: (i, 0))

    flops = 2 * B_pad * (phi_dim * H2 + 2 * H2 * H2 + H2 * OUT_W)
    bytes_accessed = sum(int(a.size) * 4 for a in inputs) + B_pad * OUT_W * 4
    cost = pl.CostEstimate(flops=int(flops),
                           transcendentals=int(B_pad * (2 * OUT_W + 2)),
                           bytes_accessed=int(bytes_accessed))

    kernel = functools.partial(ram_kernel, float(std), H, C)

    out = pl.pallas_call(
        kernel,
        out_shape=jax.ShapeDtypeStruct((B_pad, OUT_W), jnp.float32),
        grid_spec=pltpu.PrefetchScalarGridSpec(
            num_scalar_prefetch=0, grid=(n_tiles,),
            in_specs=in_specs, out_specs=out_specs),
        compiler_params=pltpu.CompilerParams(
            dimension_semantics=("parallel",),
            vmem_limit_bytes=32 * 1024 * 1024),
        cost_estimate=cost,
    )(*inputs)

    h = out[:B, 0:H]
    l = out[:B, H2:H2 + 2]
    b = jnp.squeeze(out[:B, H2 + 2:H2 + 3])   # matches torch `.squeeze()` (scalar if B==1)
    log_pi = out[:B, H2 + 3]                  # [B]; matches torch.sum(log_pi, dim=1)
    if last:
        log_prob = out[:B, H2 + 4:H2 + 4 + C]
        return h, l, b, log_pi, log_prob
    return h, l, b, log_pi


# ----------------------------------------------------------------------------
# Pure-JAX reference (for correctness check of the packed kernel).
# ----------------------------------------------------------------------------
def ram_forward_ref(params, img, loc, hidden_state, noise, *,
                    patch_size, num_scales, std):
    mm = lambda a, w: jnp.dot(a, w, precision=jax.lax.Precision.HIGHEST)
    relu = lambda v: jnp.maximum(v, 0.0)
    phi = foveate(img, loc, patch_size, num_scales)
    wphi, bphi = params["phi"]; wloc, bloc = params["loc"]
    wwhat, bwhat = params["what"]; wwhere, bwhere = params["where"]
    wi, bi = params["i2h"]; wh, bh = params["h2h"]
    wl, bl = params["locator"]; wa, ba = params["action"]; wb, bb = params["base"]

    h_g = relu(mm(phi, wphi) + bphi)
    h_l = relu(mm(loc, wloc) + bloc)
    g = relu(mm(h_g, wwhat) + bwhat + mm(h_l, wwhere) + bwhere)
    h = relu(mm(g, wi) + bi + mm(hidden_state, wh) + bh)
    mean = jnp.tanh(mm(h, wl) + bl)
    l = jnp.clip(mean + std * noise, -1.0, 1.0)
    b = jnp.squeeze(mm(h, wb) + bb)
    logp = (-((l - mean) ** 2) / (2.0 * std * std)
            - math.log(std) - 0.5 * math.log(2.0 * math.pi))
    log_pi = jnp.sum(logp, axis=1)
    log_prob = jax.nn.log_softmax(mm(hidden_state, wa) + ba, axis=1)
    return h, l, b, log_pi, log_prob


# ----------------------------------------------------------------------------
# Demo / smoke test.
# ----------------------------------------------------------------------------
if __name__ == "__main__":
    patch_size = 4
    num_scales = 2
    num_channels = 4
    hidden_dim = 32
    num_classes = 10
    std = 0.1

    B, H_img, W_img = 2, 16, 16

    key = jax.random.PRNGKey(0)
    k_img, k_loc, k_hid, k_noise, k_param = jax.random.split(key, 5)

    img = jax.random.normal(k_img, (B, num_channels, H_img, W_img), jnp.float32)
    loc = jnp.clip(jax.random.normal(k_loc, (B, 2), jnp.float32), -1.0, 1.0)
    hidden_state = jax.random.normal(k_hid, (B, hidden_dim), jnp.float32)
    noise = jax.random.normal(k_noise, (B, 2), jnp.float32)   # reparameterized sample

    params = init_ram_params(k_param, patch_size, num_scales, num_channels,
                             hidden_dim, num_classes)
    packed = pack_ram_params(params, patch_size=patch_size, num_scales=num_scales,
                             num_channels=num_channels, hidden_dim=hidden_dim,
                             num_classes=num_classes)

    h, l, b, log_pi, log_prob = ram_forward(
        packed, img, loc, hidden_state, noise,
        patch_size=patch_size, num_scales=num_scales, std=std, last=True)
    jax.block_until_ready((h, l, b, log_pi, log_prob))

    assert h.shape == (B, hidden_dim)
    assert l.shape == (B, 2)
    assert b.shape == (B,)
    assert log_pi.shape == (B,)
    assert log_prob.shape == (B, num_classes)

    # Numerical check against the plain-JAX reference.  The kernel routes h and
    # hprev through identity-carry MXU passes, so allow MXU-precision drift.
    ref = ram_forward_ref(params, img, loc, hidden_state, noise,
                          patch_size=patch_size, num_scales=num_scales, std=std)
    for name, got, want in zip(("h", "l", "b", "log_pi", "log_prob"),
                               (h, l, b, log_pi, log_prob), ref):
        assert got.shape == want.shape, (name, got.shape, want.shape)
        assert jnp.allclose(got, want, atol=2e-2, rtol=2e-2), (
            name, float(jnp.max(jnp.abs(got - want))))

    print("KERNEL_OK")
</pallas_src>

<mosaic_0001>
module attributes {stable_mosaic.version = 11 : i64} {
  func.func @ram_kernel(%arg0: i32, %arg1: memref<8x128xf32, #tpu.memory_space<vmem>>, %arg2: memref<8x128xf32, #tpu.memory_space<vmem>>, %arg3: memref<128x64xf32, #tpu.memory_space<vmem>>, %arg4: memref<2x64x64xf32, #tpu.memory_space<vmem>>, %arg5: memref<64x128xf32, #tpu.memory_space<vmem>>, %arg6: memref<5x64xf32, #tpu.memory_space<vmem>>, %arg7: memref<1x128xf32, #tpu.memory_space<vmem>>, %arg8: memref<8x128xf32, #tpu.memory_space<vmem>>) attributes {dimension_semantics = [#tpu.dimension_semantics<parallel>], iteration_bounds = array<i64: 1>, scalar_prefetch = 0 : i64, scratch_operands = 0 : i64, tpu.core_type = #tpu.core_type<tc>, window_params = [{transform_indices = @transform_0, window_bounds = array<i64: 8, 128>}, {transform_indices = @transform_1, window_bounds = array<i64: 8, 128>}, {pipeline_mode = #tpu.pipeline_mode<synchronous>, transform_indices = @transform_2, window_bounds = array<i64: 128, 64>}, {pipeline_mode = #tpu.pipeline_mode<synchronous>, transform_indices = @transform_3, window_bounds = array<i64: 2, 64, 64>}, {pipeline_mode = #tpu.pipeline_mode<synchronous>, transform_indices = @transform_4, window_bounds = array<i64: 64, 128>}, {pipeline_mode = #tpu.pipeline_mode<synchronous>, transform_indices = @transform_5, window_bounds = array<i64: 5, 64>}, {pipeline_mode = #tpu.pipeline_mode<synchronous>, transform_indices = @transform_6, window_bounds = array<i64: 1, 128>}, {transform_indices = @transform_7, window_bounds = array<i64: 8, 128>}]} {
    %c0 = arith.constant 0 : index
    %c0_0 = arith.constant 0 : index
    %0 = vector.load %arg2[%c0, %c0_0] : memref<8x128xf32, #tpu.memory_space<vmem>>, vector<8x128xf32>
    %1 = vector.extract_strided_slice %0 {offsets = [0, 66], sizes = [8, 1], strides = [1, 1]} : vector<8x128xf32> to vector<8x1xf32>
    %2 = vector.extract_strided_slice %0 {offsets = [0, 67], sizes = [8, 1], strides = [1, 1]} : vector<8x128xf32> to vector<8x1xf32>
    %c0_1 = arith.constant 0 : index
    %c0_2 = arith.constant 0 : index
    %3 = vector.load %arg1[%c0_1, %c0_2] : memref<8x128xf32, #tpu.memory_space<vmem>>, vector<8x128xf32>
    %c0_3 = arith.constant 0 : index
    %c0_4 = arith.constant 0 : index
    %4 = vector.load %arg3[%c0_3, %c0_4] : memref<128x64xf32, #tpu.memory_space<vmem>>, vector<128x64xf32>
    %cst = arith.constant dense<0.000000e+00> : vector<8x64xf32>
    %5 = tpu.matmul %3, %4, %cst {dimension_numbers = #tpu.dot_dimension_numbers<[1], [0], [0], [1], [0, 0, 1, 1], [], []>} : vector<8x128xf32>, vector<128x64xf32>, vector<8x64xf32> -> vector<8x64xf32>
    %c0_5 = arith.constant 0 : index
    %c0_6 = arith.constant 0 : index
    %6 = vector.load %arg6[%c0_5, %c0_6] : memref<5x64xf32, #tpu.memory_space<vmem>>, vector<1x64xf32>
    %7 = vector.broadcast %1 : vector<8x1xf32> to vector<8x64xf32>
    %8 = vector.broadcast %6 : vector<1x64xf32> to vector<8x64xf32>
    %9 = arith.mulf %7, %8 : vector<8x64xf32>
    %10 = arith.addf %5, %9 : vector<8x64xf32>
    %c1 = arith.constant 1 : index
    %c0_7 = arith.constant 0 : index
    %11 = vector.load %arg6[%c1, %c0_7] : memref<5x64xf32, #tpu.memory_space<vmem>>, vector<1x64xf32>
    %12 = vector.broadcast %2 : vector<8x1xf32> to vector<8x64xf32>
    %13 = vector.broadcast %11 : vector<1x64xf32> to vector<8x64xf32>
    %14 = arith.mulf %12, %13 : vector<8x64xf32>
    %15 = arith.addf %10, %14 : vector<8x64xf32>
    %c2 = arith.constant 2 : index
    %c0_8 = arith.constant 0 : index
    %16 = vector.load %arg6[%c2, %c0_8] : memref<5x64xf32, #tpu.memory_space<vmem>>, vector<1x64xf32>
    %17 = vector.broadcast %16 : vector<1x64xf32> to vector<8x64xf32>
    %18 = arith.addf %15, %17 : vector<8x64xf32>
    %cst_9 = arith.constant 0.000000e+00 : f32
    %19 = vector.broadcast %cst_9 : f32 to vector<8x64xf32>
    %20 = arith.maximumf %18, %19 : vector<8x64xf32>
    %21 = tpu.iota {dimensions = array<i32: 1>} : vector<8x64xi32>
    %c32_i32 = arith.constant 32 : i32
    %22 = vector.broadcast %c32_i32 : i32 to vector<8x64xi32>
    %23 = arith.cmpi slt, %21, %22 : vector<8x64xi32>
    %c0_10 = arith.constant 0 : index
    %c0_11 = arith.constant 0 : index
    %c0_12 = arith.constant 0 : index
    %24 = vector.load %arg4[%c0_10, %c0_11, %c0_12] : memref<2x64x64xf32, #tpu.memory_space<vmem>>, vector<1x64x64xf32>
    %25 = vector.shape_cast %24 : vector<1x64x64xf32> to vector<64x64xf32>
    %cst_13 = arith.constant dense<0.000000e+00> : vector<8x64xf32>
    %26 = tpu.matmul %20, %25, %cst_13 {dimension_numbers = #tpu.dot_dimension_numbers<[1], [0], [0], [1], [0, 0, 1, 1], [], []>} : vector<8x64xf32>, vector<64x64xf32>, vector<8x64xf32> -> vector<8x64xf32>
    %c3 = arith.constant 3 : index
    %c0_14 = arith.constant 0 : index
    %27 = vector.load %arg6[%c3, %c0_14] : memref<5x64xf32, #tpu.memory_space<vmem>>, vector<1x64xf32>
    %28 = vector.broadcast %27 : vector<1x64xf32> to vector<8x64xf32>
    %29 = arith.addf %26, %28 : vector<8x64xf32>
    %30 = vector.extract_strided_slice %0 {offsets = [0, 0], sizes = [8, 64], strides = [1, 1]} : vector<8x128xf32> to vector<8x64xf32>
    %31 = arith.addf %29, %30 : vector<8x64xf32>
    %cst_15 = arith.constant 0.000000e+00 : f32
    %32 = vector.broadcast %cst_15 : f32 to vector<8x64xf32>
    %33 = arith.maximumf %31, %32 : vector<8x64xf32>
    %34 = arith.select %23, %33, %31 : vector<8x64xi1>, vector<8x64xf32>
    %c1_16 = arith.constant 1 : index
    %c0_17 = arith.constant 0 : index
    %c0_18 = arith.constant 0 : index
    %35 = vector.load %arg4[%c1_16, %c0_17, %c0_18] : memref<2x64x64xf32, #tpu.memory_space<vmem>>, vector<1x64x64xf32>
    %36 = vector.shape_cast %35 : vector<1x64x64xf32> to vector<64x64xf32>
    %cst_19 = arith.constant dense<0.000000e+00> : vector<8x64xf32>
    %37 = tpu.matmul %34, %36, %cst_19 {dimension_numbers = #tpu.dot_dimension_numbers<[1], [0], [0], [1], [0, 0, 1, 1], [], []>} : vector<8x64xf32>, vector<64x64xf32>, vector<8x64xf32> -> vector<8x64xf32>
    %c4 = arith.constant 4 : index
    %c0_20 = arith.constant 0 : index
    %38 = vector.load %arg6[%c4, %c0_20] : memref<5x64xf32, #tpu.memory_space<vmem>>, vector<1x64xf32>
    %39 = vector.broadcast %38 : vector<1x64xf32> to vector<8x64xf32>
    %40 = arith.addf %37, %39 : vector<8x64xf32>
    %cst_21 = arith.constant 0.000000e+00 : f32
    %41 = vector.broadcast %cst_21 : f32 to vector<8x64xf32>
    %42 = arith.maximumf %40, %41 : vector<8x64xf32>
    %43 = arith.select %23, %42, %40 : vector<8x64xi1>, vector<8x64xf32>
    %c0_22 = arith.constant 0 : index
    %c0_23 = arith.constant 0 : index
    %44 = vector.load %arg5[%c0_22, %c0_23] : memref<64x128xf32, #tpu.memory_space<vmem>>, vector<64x128xf32>
    %cst_24 = arith.constant dense<0.000000e+00> : vector<8x128xf32>
    %45 = tpu.matmul %43, %44, %cst_24 {dimension_numbers = #tpu.dot_dimension_numbers<[1], [0], [0], [1], [0, 0, 1, 1], [], []>} : vector<8x64xf32>, vector<64x128xf32>, vector<8x128xf32> -> vector<8x128xf32>
    %c0_25 = arith.constant 0 : index
    %c0_26 = arith.constant 0 : index
    %46 = vector.load %arg7[%c0_25, %c0_26] : memref<1x128xf32, #tpu.memory_space<vmem>>, vector<1x128xf32>
    %47 = vector.broadcast %46 : vector<1x128xf32> to vector<8x128xf32>
    %48 = arith.addf %45, %47 : vector<8x128xf32>
    %49 = tpu.iota {dimensions = array<i32: 1>} : vector<8x128xi32>
    %c64_i32 = arith.constant 64 : i32
    %50 = vector.broadcast %c64_i32 : i32 to vector<8x128xi32>
    %51 = arith.cmpi sge, %49, %50 : vector<8x128xi32>
    %c66_i32 = arith.constant 66 : i32
    %52 = vector.broadcast %c66_i32 : i32 to vector<8x128xi32>
    %53 = arith.cmpi slt, %49, %52 : vector<8x128xi32>
    %54 = arith.andi %51, %53 : vector<8x128xi1>
    %c68_i32 = arith.constant 68 : i32
    %55 = vector.broadcast %c68_i32 : i32 to vector<8x128xi32>
    %56 = arith.cmpi sge, %49, %55 : vector<8x128xi32>
    %c78_i32 = arith.constant 78 : i32
    %57 = vector.broadcast %c78_i32 : i32 to vector<8x128xi32>
    %58 = arith.cmpi slt, %49, %57 : vector<8x128xi32>
    %59 = arith.andi %56, %58 : vector<8x128xi1>
    %60 = math.tanh %48 : vector<8x128xf32>
    %cst_27 = arith.constant 1.000000e-01 : f32
    %61 = vector.broadcast %cst_27 : f32 to vector<8x128xf32>
    %62 = arith.mulf %61, %0 : vector<8x128xf32>
    %63 = arith.addf %60, %62 : vector<8x128xf32>
    %cst_28 = arith.constant -1.000000e+00 : f32
    %cst_29 = arith.constant 1.000000e+00 : f32
    %64 = vector.broadcast %cst_28 : f32 to vector<8x128xf32>
    %65 = arith.maximumf %64, %63 : vector<8x128xf32>
    %66 = vector.broadcast %cst_29 : f32 to vector<8x128xf32>
    %67 = arith.minimumf %66, %65 : vector<8x128xf32>
    %68 = arith.subf %67, %60 : vector<8x128xf32>
    %69 = arith.mulf %68, %68 : vector<8x128xf32>
    %cst_30 = arith.constant 0.000000e+00 : f32
    %70 = vector.broadcast %cst_30 : f32 to vector<8x128xf32>
    %71 = arith.subf %70, %69 : vector<8x128xf32>
    %cst_31 = arith.constant 5.000000e+01 : f32
    %72 = vector.broadcast %cst_31 : f32 to vector<8x128xf32>
    %73 = arith.mulf %71, %72 : vector<8x128xf32>
    %cst_32 = arith.constant 1.38364661 : f32
    %74 = vector.broadcast %cst_32 : f32 to vector<8x128xf32>
    %75 = arith.addf %73, %74 : vector<8x128xf32>
    %cst_33 = arith.constant 0.000000e+00 : f32
    %76 = vector.broadcast %cst_33 : f32 to vector<8x128xf32>
    %77 = arith.select %54, %75, %76 : vector<8x128xi1>, vector<8x128xf32>
    %cst_34 = arith.constant dense<0.000000e+00> : vector<8xf32>
    %78 = vector.multi_reduction <add>, %77, %cst_34 [1] : vector<8x128xf32> to vector<8xf32>
    %79 = vector.shape_cast %78 : vector<8xf32> to vector<8x1xf32>
    %cst_35 = arith.constant -1.000000e+30 : f32
    %80 = vector.broadcast %cst_35 : f32 to vector<8x128xf32>
    %81 = arith.select %59, %48, %80 : vector<8x128xi1>, vector<8x128xf32>
    %cst_36 = arith.constant dense<0xFF800000> : vector<8xf32>
    %82 = vector.multi_reduction <maximumf>, %81, %cst_36 [1] : vector<8x128xf32> to vector<8xf32>
    %83 = vector.shape_cast %82 : vector<8xf32> to vector<8x1xf32>
    %84 = vector.broadcast %83 : vector<8x1xf32> to vector<8x128xf32>
    %85 = arith.subf %48, %84 : vector<8x128xf32>
    %cst_37 = arith.constant -1.000000e+30 : f32
    %86 = vector.broadcast %cst_37 : f32 to vector<8x128xf32>
    %87 = arith.select %59, %85, %86 : vector<8x128xi1>, vector<8x128xf32>
    %88 = math.exp %87 : vector<8x128xf32>
    %cst_38 = arith.constant dense<0.000000e+00> : vector<8xf32>
    %89 = vector.multi_reduction <add>, %88, %cst_38 [1] : vector<8x128xf32> to vector<8xf32>
    %90 = vector.shape_cast %89 : vector<8xf32> to vector<8x1xf32>
    %91 = math.log %90 : vector<8x1xf32>
    %92 = arith.addf %83, %91 : vector<8x1xf32>
    %93 = vector.broadcast %92 : vector<8x1xf32> to vector<8x128xf32>
    %94 = arith.subf %48, %93 : vector<8x128xf32>
    %95 = arith.select %54, %67, %48 : vector<8x128xi1>, vector<8x128xf32>
    %c67_i32 = arith.constant 67 : i32
    %96 = vector.broadcast %c67_i32 : i32 to vector<8x128xi32>
    %97 = arith.cmpi eq, %49, %96 : vector<8x128xi32>
    %98 = vector.shape_cast %79 : vector<8x1xf32> to vector<8x1xf32>
    %99 = vector.broadcast %98 : vector<8x1xf32> to vector<8x128xf32>
    %100 = arith.select %97, %99, %95 : vector<8x128xi1>, vector<8x128xf32>
    %101 = arith.select %59, %94, %100 : vector<8x128xi1>, vector<8x128xf32>
    %c0_39 = arith.constant 0 : index
    %c0_40 = arith.constant 0 : index
    %102 = vector.load %arg8[%c0_39, %c0_40] : memref<8x128xf32, #tpu.memory_space<vmem>>, vector<8x128xf32>
    tpu.vector_store %arg8[%c0_39, %c0_40], %101 {strides = array<i32>} : memref<8x128xf32, #tpu.memory_space<vmem>>, vector<8x128xf32>,
    return
  }
  func.func @transform_0(%arg0: i32) -> (i32, i32) {
    %c0_i32 = arith.constant 0 : i32
    %c0_i32_0 = arith.constant 0 : i32
    return %arg0, %c0_i32 : i32, i32
  }
  func.func @transform_1(%arg0: i32) -> (i32, i32) {
    %c0_i32 = arith.constant 0 : i32
    %c0_i32_0 = arith.constant 0 : i32
    return %arg0, %c0_i32 : i32, i32
  }
  func.func @transform_2(%arg0: i32) -> (i32, i32) {
    %c0_i32 = arith.constant 0 : i32
    %c0_i32_0 = arith.constant 0 : i32
    %c0_i32_1 = arith.constant 0 : i32
    return %c0_i32, %c0_i32_0 : i32, i32
  }
  func.func @transform_3(%arg0: i32) -> (i32, i32, i32) {
    %c0_i32 = arith.constant 0 : i32
    %c0_i32_0 = arith.constant 0 : i32
    %c0_i32_1 = arith.constant 0 : i32
    %c0_i32_2 = arith.constant 0 : i32
    return %c0_i32, %c0_i32_0, %c0_i32_1 : i32, i32, i32
  }
  func.func @transform_4(%arg0: i32) -> (i32, i32) {
    %c0_i32 = arith.constant 0 : i32
    %c0_i32_0 = arith.constant 0 : i32
    %c0_i32_1 = arith.constant 0 : i32
    return %c0_i32, %c0_i32_0 : i32, i32
  }
  func.func @transform_5(%arg0: i32) -> (i32, i32) {
    %c0_i32 = arith.constant 0 : i32
    %c0_i32_0 = arith.constant 0 : i32
    %c0_i32_1 = arith.constant 0 : i32
    return %c0_i32, %c0_i32_0 : i32, i32
  }
  func.func @transform_6(%arg0: i32) -> (i32, i32) {
    %c0_i32 = arith.constant 0 : i32
    %c0_i32_0 = arith.constant 0 : i32
    %c0_i32_1 = arith.constant 0 : i32
    return %c0_i32, %c0_i32_0 : i32, i32
  }
  func.func @transform_7(%arg0: i32) -> (i32, i32) {
    %c0_i32 = arith.constant 0 : i32
    %c0_i32_0 = arith.constant 0 : i32
    return %arg0, %c0_i32 : i32, i32
  }
}

</mosaic_0001>

<bundles_post_ra>
// kernel: tpu_custom_call.1
= control target key start
LH: loop header
LB: loop body
LE: loop exit
PB: predicated region body
PF: predicated region fallthrough
CT: control target
= control target key end

     0   :  { %12 = vsyncpa [#allocation3], 0  ;;  %s1030_s0 = inlined_call_operand.vmem [shape: f32[8,128], index: 0, kind: input, shape index: {}]   ;;  %s1031_s1 = inlined_call_operand.hbm [shape: f32[8,128], index: 1, kind: input, shape index: {}]   ;;  %s1032_s2 = inlined_call_operand.vmem [shape: f32[128,64], index: 2, kind: input, shape index: {}]   ;;  %s1033_s3 = inlined_call_operand.vmem [shape: f32[2,64,64], index: 3, kind: input, shape index: {}]   ;;  %s1034_s4 = inlined_call_operand.vmem [shape: f32[64,128], index: 4, kind: input, shape index: {}]   ;;  %s1035_s5 = inlined_call_operand.vmem [shape: f32[5,64], index: 5, kind: input, shape index: {}]   ;;  %s1036_s6 = inlined_call_operand.vmem [shape: f32[1,128], index: 6, kind: input, shape index: {}]   ;;  %s1037_s7 = inlined_call_operand.hbm [shape: f32[8,128], index: 7, kind: output, shape index: {}]  }
   0x1   :  { %13 = vsyncpa [#allocation4], 0  ;;  %s755_s24 = smov [#allocation2]   ;;  %s707_s28 = scalar_lea.hbm %s1031_s1, 128 }
   0x2   :  { %s22_s25 = sshll.u32 %s755_s24, 4  ;;  %p708_p0 = scmp.ne.s32.totalorder %s1031_s1, %s707_s28  ;;  %s23_s25 = int_to_ptr.vmem [resolvable:$true] %s22_s25 }
   0x3   :  { %p711_p1 = scmp.lt.u32.totalorder %s707_s28, %s1031_s1 }
   0x5   :  { %p713_p2 = pnand %p711_p1, %p708_p0 }
   0x7   :  { %716 = shalt.err (!%p713_p2)
}
   0x8   :  { %s717_s10 = scalar_lea.vmem %s23_s25, 128  ;;  %p722_p4 = scmp.lt.s32.totalorder %s23_s25, %s23_s25 }
   0x9   :  { %p718_p3 = scmp.ne.s32.totalorder %s23_s25, %s717_s10  ;;  %p723_p5 = scmp.lt.s32.totalorder %s717_s10, %s717_s10 }
   0xb   :  { %p724_p6 = por %p723_p5, %p722_p4 }
   0xd   :  { %p725_p7 = pnand %p724_p6, %p718_p3 }
   0xf   :  { %728 = shalt.err (!%p725_p7)
}
  0x10   :  { %25 = dma.hbm_to_vmem [thread:$0]  %s1031_s1, 128, %s23_s25, [#allocation3]  }
  0x11   :  { %751 = dma.done.wait [#allocation3], 128  }
  0x12   :  { %752 = vsyncadd [#allocation3], 4294967168  ;;  %v756_v0 = vmov 0.0|0.0   ;;  %vm757_vm0 = vmmov 0   ;;  %v758_v1 = vmov 0.0   ;;  %v759_v2 = vmov 66  }
  0x13   :  { %632 = vmatprep.subr.bf16.mxu0 %v756_v0  ;;  %572 = vmatprep.mubr.msk.f32.mxu0 %vm757_vm0, %v758_v1  ;;  %v41_v3 = vld [vmem:[%s1032_s2] sm:$0xff]  ;;  %v42_v4 = vld [vmem:[%s1032_s2 + $0x8] sm:$0xff]  ;;  %v43_v5 = vld [vmem:[%s1032_s2 + $0x10] sm:$0xff]  ;;  %v760_v21 = vmov 67   ;;  %vm172_vm1 = vcmask 523264  }
  0x14   :  { %699 = vset.pattern.permute.xlu0 %v759_v2  ;;  %656 = vmatprep.subr.bf16.mxu1 %v756_v0  ;;  %v633_v6 = vpack.c.bf16 %v42_v4, %v41_v3  ;;  %v44_v7 = vld [vmem:[%s1032_s2 + $0x18] sm:$0xff]  ;;  %v45_v9 = vld [vmem:[%s1032_s2 + $0x20] sm:$0xff]  ;;  %v46_v10 = vld [vmem:[%s1032_s2 + $0x28] sm:$0xff] }
  0x15   :  { %591 = vmatprep.mubr.msk.f32.mxu1 %vm757_vm0, %v758_v1  ;;  %v636_v8 = vpack.c.bf16 %v44_v7, %v43_v5  ;;  %v839_v11 = vld [vmem:[#allocation2] sm:$0xff]  ;;  %v160_v13 = vld [vmem:[%s1033_s3 + $0x8] sm:$0xff]  ;;  %v639_v14 = vpack.c.bf16 %v46_v10, %v45_v9  ;;  %v161_v16 = vld [vmem:[%s1033_s3 + $0x10] sm:$0xff] }
  0x16   :  { %634 = vmatpush3.bf16.msra.mxu0 %v633_v6  ;;  %60 = vperm.xlu0 %699, %v839_v11   ;;  %v159_v12 = vld [vmem:[%s1033_s3] sm:$0xff]  ;;  %v162_v17 = vld [vmem:[%s1033_s3 + $0x18] sm:$0xff]  ;;  %v47_v18 = vld [vmem:[%s1032_s2 + $0x30] sm:$0xff] }
  0x17   :  { %635 = vmatprep.subr.bf16.mxu0 %v756_v0  ;;  %v657_v15 = vpack.c.bf16 %v160_v13, %v159_v12  ;;  %v48_v19 = vld [vmem:[%s1032_s2 + $0x38] sm:$0xff]  ;;  %v660_v20 = vpack.c.bf16 %v162_v17, %v161_v16  ;;  %v49_v23 = vld [vmem:[%s1032_s2 + $0x40] sm:$0xff]  ;;  %v50_v24 = vld [vmem:[%s1032_s2 + $0x48] sm:$0xff] }
  0x18   :  { %v642_v22 = vpack.c.bf16 %v48_v19, %v47_v18  ;;  %v645_v25 = vpack.c.bf16 %v50_v24, %v49_v23  ;;  %v51_v26 = vld [vmem:[%s1032_s2 + $0x50] sm:$0xff]  ;;  %v52_v27 = vld [vmem:[%s1032_s2 + $0x58] sm:$0xff]  ;;  %v53_v29 = vld [vmem:[%s1032_s2 + $0x60] sm:$0xff] }
  0x19   :  { %658 = vmatpush3.bf16.msra.mxu1 %v657_v15  ;;  %v648_v28 = vpack.c.bf16 %v52_v27, %v51_v26  ;;  %v54_v30 = vld [vmem:[%s1032_s2 + $0x68] sm:$0xff]  ;;  %v55_v32 = vld [vmem:[%s1032_s2 + $0x70] sm:$0xff]  ;;  %v56_v33 = vld [vmem:[%s1032_s2 + $0x78] sm:$0xff] }
  0x1a   :  { %637 = vmatpush3.bf16.msra.mxu0 %v636_v8  ;;  %700 = vset.pattern.permute.xlu0 %v760_v21  ;;  %v651_v31 = vpack.c.bf16 %v54_v30, %v53_v29  ;;  %v654_v34 = vpack.c.bf16 %v56_v33, %v55_v32  ;;  %v40_v35 = vld [vmem:[%s1030_s0] sm:$0xff]  ;;  %v164_v37 = vld [vmem:[%s1033_s3 + $0x28] sm:$0xff]  ;;  %v165_v39 = vld [vmem:[%s1033_s3 + $0x30] sm:$0xff] }
  0x1b   :  { %638 = vmatprep.subr.bf16.mxu0 %v756_v0  ;;  %659 = vmatprep.subr.bf16.mxu1 %v756_v0  ;;  %v163_v36 = vld [vmem:[%s1033_s3 + $0x20] sm:$0xff]  ;;  %v166_v40 = vld [vmem:[%s1033_s3 + $0x38] sm:$0xff]  ;;  %v484_v54 = vld [vmem:[%s1033_s3 + $0x48] sm:$0xff] }
  0x1c   :  { %140 = vperm.xlu0 %700, %v839_v11   ;;  %v663_v38 = vpack.c.bf16 %v164_v37, %v163_v36  ;;  %v666_v41 = vpack.c.bf16 %v166_v40, %v165_v39  ;;  %v478_v43 = vld [vmem:[%s1035_s5] ss:$0 sm:$0xff]  ;;  %v479_v44 = vld [vmem:[%s1035_s5 + $0x1] ss:$0 sm:$0xff]  ;;  %v480_v51 = vld [vmem:[%s1035_s5 + $0x2] ss:$0 sm:$0xff] }
  0x1d   :  { %661 = vmatpush3.bf16.msra.mxu1 %v660_v20  ;;  %v483_v53 = vld [vmem:[%s1033_s3 + $0x40] sm:$0xff]  ;;  %v485_v58 = vld [vmem:[%s1033_s3 + $0x50] sm:$0xff]  ;;  %v486_v59 = vld [vmem:[%s1033_s3 + $0x58] sm:$0xff]  ;;  %v433_v37 = vmul.f32 0.1, %v839_v11 }
  0x1e   :  { %640 = vmatpush3.bf16.msra.mxu0 %v639_v14  ;;  %662 = vmatprep.subr.bf16.mxu1 %v756_v0  ;;  %v669_v56 = vpack.c.bf16 %v484_v54, %v483_v53  ;;  %v672_v60 = vpack.c.bf16 %v486_v59, %v485_v58  ;;  %v487_v61 = vld [vmem:[%s1033_s3 + $0x60] sm:$0xff]  ;;  %v488_v62 = vld [vmem:[%s1033_s3 + $0x68] sm:$0xff]  ;;  %v490_v2 = vld [vmem:[%s1033_s3 + $0x78] sm:$0xff]  ;;  %v156_v14 = vlaneseq }
  0x1f   :  { %641 = vmatprep.subr.bf16.mxu0 %v756_v0  ;;  %v675_v63 = vpack.c.bf16 %v488_v62, %v487_v61  ;;  %v338_v4 = vld [vmem:[%s1034_s4] sm:$0xff]  ;;  %v339_v5 = vld [vmem:[%s1034_s4 + $0x8] sm:$0xff]  ;;  %v340_v6 = vld [vmem:[%s1034_s4 + $0x10] sm:$0xff] }
  0x20   :  { %v681_v7 = vpack.c.bf16 %v339_v5, %v338_v4  ;;  %v341_v8 = vld [vmem:[%s1034_s4 + $0x18] sm:$0xff]  ;;  %v342_v10 = vld [vmem:[%s1034_s4 + $0x20] sm:$0xff]  ;;  %v343_v12 = vld [vmem:[%s1034_s4 + $0x28] sm:$0xff]  ;;  %v976_v17 = vand.u32 127, %v156_v14 }
  0x21   :  { %664 = vmatpush3.bf16.msra.mxu1 %v663_v38  ;;  %v684_v9 = vpack.c.bf16 %v341_v8, %v340_v6  ;;  %v687_v13 = vpack.c.bf16 %v343_v12, %v342_v10  ;;  %v481_v15 = vld [vmem:[%s1035_s5 + $0x3] ss:$0 sm:$0xff]  ;;  %v345_v23 = vld [vmem:[%s1034_s4 + $0x38] sm:$0xff] }
  0x22   :  { %643 = vmatpush3.bf16.msra.mxu0 %v642_v22  ;;  %665 = vmatprep.subr.bf16.mxu1 %v756_v0  ;;  %vm158_vm2 = vcmp.lt.s32.totalorder %v976_v17, 32  ;;  %vm429_vm3 = vcmp.ge.s32.totalorder %v976_v17, 68  ;;  %vm430_vm4 = vcmp.lt.s32.totalorder %v976_v17, 78  ;;  %vm426_vm6 = vcmp.ge.s32.totalorder %v976_v17, 64 }
  0x23   :  { %644 = vmatprep.subr.bf16.mxu0 %v756_v0  ;;  %vm996_vm5 = vmand %vm429_vm3, %vm430_vm4  ;;  %vm427_vm7 = vcmp.lt.s32.totalorder %v976_v17, 66  ;;  %vm459_vm9 = vcmp.eq.s32.totalorder %v976_v17, 67 }
  0x24   :  { %vm1005_vm8 = vmand %vm426_vm6, %vm427_vm7 }
  0x25   :  { %667 = vmatpush3.bf16.msra.mxu1 %v666_v41 }
  0x26   :  { %646 = vmatpush3.bf16.msra.mxu0 %v645_v25  ;;  %668 = vmatprep.subr.bf16.mxu1 %v756_v0  ;;  %v491_v25 = vld [vmem:[%s1035_s5 + $0x4] ss:$0 sm:$0xff] }
  0x27   :  { %647 = vmatprep.subr.bf16.mxu0 %v756_v0 }
  0x2a   :  { %649 = vmatpush3.bf16.msra.mxu0 %v648_v28 }
  0x2b   :  { %650 = vmatprep.subr.bf16.mxu0 %v756_v0 }
  0x2e   :  { %652 = vmatpush3.bf16.msra.mxu0 %v651_v31  ;;  %v493_v31 = vld [vmem:[%s1036_s6] ss:$0 sm:$0xff] }
  0x2f   :  { %653 = vmatprep.subr.bf16.mxu0 %v756_v0 }
  0x32   :  { %655 = vmatpush3.bf16.msra.mxu0 %v654_v34 }
  0x33   :  { %680 = vmatprep.subr.bf16.mxu0 %v756_v0 }
  0x35   :  { %573 = vmatmul.mubr.f32.vlgmr.msra.gmra.mrb[0].mxu0 %v40_v35 }
  0x36   :  { %629 = vmatprep.mubr.msk.f32.mxu0 %vm757_vm0, %v758_v1  ;;  %682 = vmatpush3.bf16.msra.mxu0 %v681_v7 }
  0x37   :  { %683 = vmatprep.subr.bf16.mxu0 %v756_v0 }
  0x3a   :  { %685 = vmatpush3.bf16.msra.mxu0 %v684_v9 }
  0x3b   :  { %686 = vmatprep.subr.bf16.mxu0 %v756_v0 }
  0x3e   :  { %688 = vmatpush3.bf16.msra.mxu0 %v687_v13 }
  0x3f   :  { %689 = vmatprep.subr.bf16.mxu0 %v756_v0 }
  0x95   :  { %v61_v42 = vpop.permute.xlu0 %60 }
  0x96   :  { %v67_v46 = vmul.f32 %v478_v43, %v61_v42 }
  0x9b   :  { %v141_v45 = vpop.permute.xlu0 %140 }
  0x9c   :  { %v147_v47 = vmul.f32 %v479_v44, %v141_v45 }
 0x108   :  { %v134_v48 = vpop.f32.mrb[0].mxu0 }
 0x109   :  { %v135_v49 = vadd.f32 %v134_v48, %v67_v46  ;;  %v574_v50 = vpop.f32.mrb[1].mxu0 }
 0x10b   :  { %v148_v52 = vadd.f32 %v147_v47, %v135_v49 }
 0x10d   :  { %v154_v55 = vadd.f32 %v480_v51, %v148_v52 }
 0x10f   :  { %v155_v57 = vmax.f32 %v154_v55, 0.0 }
 0x111   :  { %592 = vmatmul.mubr.msk.f32.vlgmr.msra.gmra.mrb[0].mxu1 %vm172_vm1, %v155_v57 }
 0x112   :  { %670 = vmatpush3.bf16.msra.mxu1 %v669_v56  ;;  %610 = vmatprep.mubr.msk.f32.mxu1 %vm757_vm0, %v758_v1  ;;  %v489_v1 = vld [vmem:[%s1033_s3 + $0x70] sm:$0xff] }
 0x113   :  { %671 = vmatprep.subr.bf16.mxu1 %v756_v0  ;;  %v678_v3 = vpack.c.bf16 %v490_v2, %v489_v1 }
 0x116   :  { %673 = vmatpush3.bf16.msra.mxu1 %v672_v60 }
 0x117   :  { %674 = vmatprep.subr.bf16.mxu1 %v756_v0 }
 0x11a   :  { %676 = vmatpush3.bf16.msra.mxu1 %v675_v63 }
 0x11b   :  { %677 = vmatprep.subr.bf16.mxu1 %v756_v0  ;;  %v344_v0 = vld [vmem:[%s1034_s4 + $0x30] sm:$0xff]  ;;  %s761_s4 = smov [#allocation5]  }
 0x11c   :  { %v690_v24 = vpack.c.bf16 %v345_v23, %v344_v0  ;;  %s469_s5 = sshll.u32 %s761_s4, 4  ;;  %s470_s5 = int_to_ptr.vmem [resolvable:$true] %s469_s5 }
 0x11d   :  { %s729_s6 = scalar_lea.vmem %s470_s5, 128  ;;  %p734_p9 = scmp.lt.s32.totalorder %s470_s5, %s470_s5 }
 0x11e   :  { %679 = vmatpush3.bf16.msra.mxu1 %v678_v3  ;;  %691 = vmatpush3.bf16.msra.mxu0 %v690_v24  ;;  %p730_p8 = scmp.ne.s32.totalorder %s470_s5, %s729_s6  ;;  %p735_p10 = scmp.lt.s32.totalorder %s729_s6, %s729_s6 }
 0x120   :  { %p736_p11 = por %p735_p10, %p734_p9 }
 0x122   :  { %p737_p12 = pnand %p736_p11, %p730_p8 }
 0x1e4   :  { %v242_v16 = vpop.f32.mrb[0].mxu1 }
 0x1e5   :  { %v243_v18 = vadd.f32 %v481_v15, %v242_v16  ;;  %v593_v19 = vpop.f32.mrb[1].mxu1 }
 0x1e7   :  { %v246_v20 = vadd.f32 %v243_v18, %v839_v11 }
 0x1e9   :  { %v247_v21 = vmax.f32 %v246_v20, 0.0 }
 0x1eb   :  { %v248_v22 = vsel %vm158_vm2, %v247_v21, %v246_v20 }
 0x1ec   :  { %611 = vmatmul.mubr.msk.f32.vlgmr.msra.gmra.mrb[2].mxu1 %vm172_vm1, %v248_v22 }
 0x2bf   :  { %v332_v26 = vpop.f32.mrb[2].mxu1 }
 0x2c0   :  { %v333_v27 = vadd.f32 %v491_v25, %v332_v26  ;;  %v612_v28 = vpop.f32.mrb[3].mxu1 }
 0x2c2   :  { %v336_v29 = vmax.f32 %v333_v27, 0.0 }
 0x2c4   :  { %v337_v30 = vsel %vm158_vm2, %v336_v29, %v333_v27 }
 0x2c5   :  { %630 = vmatmul.mubr.msk.f32.vlgmr.msra.gmra.mrb[2].mxu0 %vm172_vm1, %v337_v30 }
 0x398   :  { %v422_v32 = vpop.f32.mrb[2].mxu0 }
 0x399   :  { %v423_v34 = vadd.f32 %v493_v31, %v422_v32  ;;  %v631_v35 = vpop.f32.mrb[3].mxu0 }
 0x39b   :  { %701 = vtanh.f32 %v423_v34  ;;  %v445_v36 = vsel %vm996_vm5, %v423_v34, -1e+30 }
 0x39c   :  { %446 = vmax.xlane.f32.xlu1 %v445_v36 }
 0x3a5   :  { %v702_v38 = vpop.eup %701 }
 0x3a6   :  { %v434_v39 = vadd.f32 %v702_v38, %v433_v37 }
 0x3a8   :  { %v495_v41 = vclamps-f32 %v434_v39, 1.0 }
 0x3aa   :  { %v458_v42 = vsel %vm1005_vm8, %v495_v41, %v423_v34  ;;  %v437_v44 = vsub.f32 %v495_v41, %v702_v38 }
 0x3ac   :  { %v438_v47 = vmul.f32 %v437_v44, %v437_v44 }
 0x3ae   :  { %v439_v48 = vsub.f32 0.0, %v438_v47 }
 0x3b0   :  { %v440_v49 = vmul.f32 50.0, %v439_v48 }
 0x3b2   :  { %v441_v51 = vadd.f32 1.3836466, %v440_v49 }
 0x3b4   :  { %v442_v52 = vsel %vm1005_vm8, %v441_v51, 0.0 }
 0x429   :  { %v447_v43 = vpop.xlane.xlu1 %446 }
 0x42a   :  { %v448_v45 = vsub.f32 %v423_v34, %v447_v43 }
 0x42c   :  { %v449_v11 = vsel %vm996_vm5, %v448_v45, -1e+30 }
 0x42d   :  { %v450_v46 = vmul.f32 1.442695, %v449_v11 }
 0x42f   :  { %703 = vpow2.f32 %v450_v46 }
 0x439   :  { %v704_v50 = vpop.eup %703 }
 0x43a   :  { %452 = vadd.xlane.f32.xlu1 %v704_v50 }
 0x43e   :  { %443 = vadd.xlane.f32.xlu1 %v442_v52 }
 0x4c7   :  { %v453_v53 = vpop.xlane.xlu1 %452 }
 0x4c8   :  { %705 = vlog2.f32 %v453_v53 }
 0x4cb   :  { %v444_v57 = vpop.xlane.xlu1 %443 }
 0x4cc   :  { %v460_v59 = vsel %vm459_vm9, %v444_v57, %v458_v42 }
 0x4d2   :  { %v706_v54 = vpop.eup %705 }
 0x4d3   :  { %v455_v55 = vmul.f32 0.6931472, %v706_v54 }
 0x4d5   :  { %v456_v56 = vadd.f32 %v455_v55, %v447_v43 }
 0x4d7   :  { %v457_v58 = vsub.f32 %v423_v34, %v456_v56 }
 0x4d9   :  { %v461_v60 = vsel %vm996_vm5, %v457_v58, %v460_v59 }
 0x4da   :  { %462 = vst [vmem:[#allocation5] sm:$0xff] %v461_v60 }
 0x4db   :  { %740 = shalt.err (!%p737_p12)
}
 0x4dc   :  { %s741_s8 = scalar_lea.hbm %s1037_s7, 128 }
 0x4dd   :  { %p742_p13 = scmp.ne.s32.totalorder %s1037_s7, %s741_s8  ;;  %p745_p0 = scmp.lt.u32.totalorder %s741_s8, %s1037_s7 }
 0x4df   :  { %p747_p1 = pnand %p745_p0, %p742_p13 }
 0x4e1   :  { %750 = shalt.err (!%p747_p1)
}
 0x4e2   :  { %472 = dma.vmem_to_hbm [thread:$0]  %s470_s5, 128, %s1037_s7, [#allocation4]  }
 0x4e3   :  { %753 = dma.done.wait [#allocation4], 128  }
 0x4e4   :  { %754 = vsyncadd [#allocation4], 4294967168 }
 0x4e5   :  { %476 = vsyncpa [#allocation3], 1 }
 0x4e6   :  { %477 = vsyncpa [#allocation4], 1 }

</bundles_post_ra>
